<compile_context>
chip_gen: v7x
topology: tpu7x:2x2x1
jax: 0.10.0
libtpu: 0.0.40
codegen_flags: <defaults>
</compile_context>

<pallas_src>
import math
from functools import partial

import jax
import jax.numpy as jnp
from jax.experimental import pallas as pl
from jax.experimental.pallas import tpu as pltpu


# ---------------------------------------------------------------------------
# Tiling helpers
# ---------------------------------------------------------------------------

def _pick_tile(dim, pref, align):
    """Largest tile <= pref that divides dim and is a multiple of `align`;
    falls back to the full dimension (block == full extent is always legal)."""
    if dim <= pref:
        return dim
    t = (pref // align) * align
    while t >= align:
        if dim % t == 0:
            return t
        t -= align
    return dim


# 48 MiB: <= v7x physical VMEM (64 MiB) with headroom for double-buffered
# inputs + f32 accumulator; well under v5e/v6e's 128 MiB.
_VMEM_LIMIT = 48 * 1024 * 1024


def _apply_act(y, activation):
    if activation == "gelu":          # exact (erf) GELU, as in BERT
        return 0.5 * y * (1.0 + jax.lax.erf(y * jnp.float32(1.0 / math.sqrt(2.0))))
    if activation == "tanh":
        return jnp.tanh(y)
    return y


# ---------------------------------------------------------------------------
# Dense: tiled matmul + bias + optional activation (bf16 MXU, f32 accumulate)
# ---------------------------------------------------------------------------

def _dense_kernel_acc(x_ref, w_ref, b_ref, o_ref, acc_ref, *, activation):
    """Variant with f32 VMEM accumulator (used when out_dtype != f32)."""
    @pl.when(pl.program_id(2) == 0)
    def _init():
        acc_ref[...] = jnp.zeros_like(acc_ref)

    acc_ref[...] += jnp.dot(x_ref[...], w_ref[...],
                            preferred_element_type=jnp.float32)

    @pl.when(pl.program_id(2) == pl.num_programs(2) - 1)
    def _finalize():
        y = acc_ref[...] + b_ref[...]
        o_ref[...] = _apply_act(y, activation).astype(o_ref.dtype)


def _dense_kernel_noacc(x_ref, w_ref, b_ref, o_ref, *, activation):
    """f32 output: accumulate directly into the resident output block
    (saves tm*tn*4 bytes of VMEM + the epilogue copy)."""
    @pl.when(pl.program_id(2) == 0)
    def _init():
        o_ref[...] = jnp.zeros_like(o_ref)

    o_ref[...] += jnp.dot(x_ref[...], w_ref[...],
                          preferred_element_type=jnp.float32)

    @pl.when(pl.program_id(2) == pl.num_programs(2) - 1)
    def _finalize():
        o_ref[...] = _apply_act(o_ref[...] + b_ref[...], activation)


def dense(x, w, b, activation=None, out_dtype=jnp.float32):
    """x: (M, K) @ w: (K, N) + b: (N,), optional fused activation.

    `x` is expected to already be bf16 (producing kernels emit bf16); `w` is
    pre-cast to bf16 once at init.  f32 accumulation on the MXU.
    """
    M, K = x.shape
    N = w.shape[1]
    if x.dtype != jnp.bfloat16:           # producers already emit bf16; safety net
        x = x.astype(jnp.bfloat16)
    b = b.astype(jnp.float32).reshape(1, N)

    # MXU-native 128 alignment (v5e 128x128, v6e/v7x 256x256); full-dim fallback.
    tm = _pick_tile(M, 256, 128)
    tn = _pick_tile(N, 512, 128)
    tk = _pick_tile(K, 512, 128)
    grid = (M // tm, N // tn, K // tk)

    cost = pl.CostEstimate(
        flops=2 * M * N * K,
        transcendentals=M * N if activation in ("gelu", "tanh") else 0,
        bytes_accessed=(M * K + K * N) * 2 + N * 4
                       + M * N * jnp.dtype(out_dtype).itemsize,
    )

    use_acc = jnp.dtype(out_dtype) != jnp.dtype(jnp.float32)
    kernel = partial(_dense_kernel_acc if use_acc else _dense_kernel_noacc,
                     activation=activation)
    scratch = [pltpu.VMEM((tm, tn), jnp.float32)] if use_acc else []

    return pl.pallas_call(
        kernel,
        out_shape=jax.ShapeDtypeStruct((M, N), out_dtype),
        grid=grid,
        in_specs=[
            pl.BlockSpec((tm, tk), lambda i, j, k: (i, k)),
            pl.BlockSpec((tk, tn), lambda i, j, k: (k, j)),
            pl.BlockSpec((1, tn), lambda i, j, k: (0, j)),
        ],
        out_specs=pl.BlockSpec((tm, tn), lambda i, j, k: (i, j)),
        scratch_shapes=scratch,
        compiler_params=pltpu.CompilerParams(
            dimension_semantics=("parallel", "parallel", "arbitrary"),
            vmem_limit_bytes=_VMEM_LIMIT),
        cost_estimate=cost,
    )(x, w, b)


# ---------------------------------------------------------------------------
# LayerNorm (row-tiled), optional fused residual add, bf16 output option
# ---------------------------------------------------------------------------

def _ln_kernel(x_ref, g_ref, b_ref, o_ref, *, eps):
    x = x_ref[...].astype(jnp.float32)
    mu = jnp.mean(x, axis=-1, keepdims=True)
    var = jnp.mean((x - mu) ** 2, axis=-1, keepdims=True)
    o_ref[...] = ((x - mu) * jax.lax.rsqrt(var + eps)
                  * g_ref[...] + b_ref[...]).astype(o_ref.dtype)


def _ln_res_kernel(x_ref, r_ref, g_ref, b_ref, o_ref, *, eps):
    x = x_ref[...].astype(jnp.float32) + r_ref[...].astype(jnp.float32)
    mu = jnp.mean(x, axis=-1, keepdims=True)
    var = jnp.mean((x - mu) ** 2, axis=-1, keepdims=True)
    o_ref[...] = ((x - mu) * jax.lax.rsqrt(var + eps)
                  * g_ref[...] + b_ref[...]).astype(o_ref.dtype)


def layernorm(x, gamma, beta, residual=None, eps=1e-12, out_dtype=jnp.bfloat16):
    M, H = x.shape
    tm = _pick_tile(M, 512, 8)
    grid = (M // tm,)
    row_spec = pl.BlockSpec((tm, H), lambda i: (i, 0))
    vec_spec = pl.BlockSpec((1, H), lambda i: (0, 0))

    if residual is None:
        kernel = partial(_ln_kernel, eps=eps)
        in_specs = [row_spec, vec_spec, vec_spec]
        args = (x, gamma.reshape(1, H), beta.reshape(1, H))
    else:
        kernel = partial(_ln_res_kernel, eps=eps)
        in_specs = [row_spec, row_spec, vec_spec, vec_spec]
        args = (x, residual, gamma.reshape(1, H), beta.reshape(1, H))

    return pl.pallas_call(
        kernel,
        out_shape=jax.ShapeDtypeStruct((M, H), out_dtype),
        grid=grid,
        in_specs=in_specs,
        out_specs=row_spec,
        compiler_params=pltpu.CompilerParams(
            dimension_semantics=("parallel",),
            vmem_limit_bytes=_VMEM_LIMIT),
    )(*args)


# ---------------------------------------------------------------------------
# Attention: grid = (batch, head); lane-dense (S, Dh) q/k/v tiles per step
# ---------------------------------------------------------------------------

def _attn_kernel(qkv_ref, m_ref, o_ref, *, head_dim):
    # qkv_ref: (3, 1, 1, S, Dh) bf16 -> q/k/v selected on leading axis (no lane
    # slicing, no relayout).
    q = qkv_ref[0, 0, 0]                     # (S, Dh)
    k = qkv_ref[1, 0, 0]                     # (S, Dh)
    v = qkv_ref[2, 0, 0]                     # (S, Dh)
    mask = m_ref[0]                          # (1, S) additive mask, f32

    scale = jnp.float32(1.0 / math.sqrt(head_dim))
    # contract on Dh without materializing K^T
    s = jax.lax.dot_general(q, k, (((1,), (1,)), ((), ())),
                            preferred_element_type=jnp.float32)   # (S, S)
    s = s * scale + mask                     # mask broadcasts over query rows
    s = s - jnp.max(s, axis=-1, keepdims=True)
    p = jnp.exp(s)
    p = p * pl.reciprocal(jnp.sum(p, axis=-1, keepdims=True), approx=True)
    ctx = jnp.dot(p.astype(v.dtype), v, preferred_element_type=jnp.float32)
    o_ref[0, 0] = ctx.astype(o_ref.dtype)    # full lane-dense (S, Dh) block
    # TODO(synk): for long sequences (S >= 512) tile over KV blocks with online
    # softmax (flash-style m/l/acc scratch) instead of the full (S, S) scores.


def attention(qkv5, add_mask, out_dtype=jnp.bfloat16):
    """qkv5: (3, B, nh, S, Dh) bf16 fused projections; add_mask: (B, 1, S) f32."""
    _, B, nh, S, Dh = qkv5.shape
    cost = pl.CostEstimate(
        flops=4 * B * nh * S * S * Dh,
        transcendentals=B * nh * S * S,
        bytes_accessed=3 * B * nh * S * Dh * 2 + B * S * 4
                       + B * nh * S * Dh * jnp.dtype(out_dtype).itemsize,
    )
    return pl.pallas_call(
        partial(_attn_kernel, head_dim=Dh),
        out_shape=jax.ShapeDtypeStruct((B, nh, S, Dh), out_dtype),
        grid=(B, nh),
        in_specs=[
            pl.BlockSpec((3, 1, 1, S, Dh), lambda b, h: (0, b, h, 0, 0)),
            pl.BlockSpec((1, 1, S), lambda b, h: (b, 0, 0)),
        ],
        out_specs=pl.BlockSpec((1, 1, S, Dh), lambda b, h: (b, h, 0, 0)),
        compiler_params=pltpu.CompilerParams(
            dimension_semantics=("parallel", "parallel"),
            vmem_limit_bytes=_VMEM_LIMIT),
        cost_estimate=cost,
    )(qkv5, add_mask)


# ---------------------------------------------------------------------------
# Model (BertForNextSentencePrediction, synthetic tiny config)
# ---------------------------------------------------------------------------

CFG = dict(
    vocab_size=100,
    hidden_size=32,
    num_heads=2,
    num_layers=2,
    intermediate_size=64,
    max_position=16,
    type_vocab_size=2,
    num_nsp_labels=2,
)


def init_params(key, cfg):
    H, I = cfg["hidden_size"], cfg["intermediate_size"]

    def nrm(k, shape):
        return jax.random.normal(k, shape, jnp.float32) * 0.02

    def nrm_bf16(k, shape):
        # matmul weights are pre-cast to bf16 ONCE here (no per-call astype).
        return nrm(k, shape).astype(jnp.bfloat16)

    keys = iter(jax.random.split(key, 8 + cfg["num_layers"] * 16))
    p = {
        "word_emb": nrm(next(keys), (cfg["vocab_size"], H)),
        "pos_emb": nrm(next(keys), (cfg["max_position"], H)),
        "type_emb": nrm(next(keys), (cfg["type_vocab_size"], H)),
        "emb_ln_g": jnp.ones((H,), jnp.float32),
        "emb_ln_b": jnp.zeros((H,), jnp.float32),
        "pooler_w": nrm(next(keys), (H, H)),
        "pooler_b": jnp.zeros((H,), jnp.float32),
        "nsp_w": nrm(next(keys), (H, cfg["num_nsp_labels"])),
        "nsp_b": jnp.zeros((cfg["num_nsp_labels"],), jnp.float32),
        "layers": [],
    }
    for _ in range(cfg["num_layers"]):
        layer = {
            # fused Q|K|V projection: (H, 3H); column order (qkv, head, dh)
            "wqkv": nrm_bf16(next(keys), (H, 3 * H)),
            "bqkv": jnp.zeros((3 * H,), jnp.float32),
            "wo": nrm_bf16(next(keys), (H, H)), "bo": jnp.zeros((H,), jnp.float32),
            "ln1_g": jnp.ones((H,), jnp.float32), "ln1_b": jnp.zeros((H,), jnp.float32),
            "w1": nrm_bf16(next(keys), (H, I)), "b1": jnp.zeros((I,), jnp.float32),
            "w2": nrm_bf16(next(keys), (I, H)), "b2": jnp.zeros((H,), jnp.float32),
            "ln2_g": jnp.ones((H,), jnp.float32), "ln2_b": jnp.zeros((H,), jnp.float32),
        }
        p["layers"].append(layer)
    return p


def cross_encoder_forward(params, input_ids, token_type_ids, attention_mask,
                          labels=None, cfg=CFG):
    """Mirrors CrossEncoder.forward -> BertForNextSentencePrediction."""
    B, S = input_ids.shape
    H = cfg["hidden_size"]
    nh = cfg["num_heads"]
    dh = H // nh

    # --- embeddings (gathers are glue; layernorm is Pallas, emits bf16) ------
    pos_ids = jnp.arange(S, dtype=jnp.int32)
    emb = (jnp.take(params["word_emb"], input_ids, axis=0)
           + jnp.take(params["pos_emb"], pos_ids, axis=0)[None, :, :]
           + jnp.take(params["type_emb"], token_type_ids, axis=0))
    x = layernorm(emb.reshape(B * S, H), params["emb_ln_g"], params["emb_ln_b"],
                  out_dtype=jnp.bfloat16)

    # BERT-style additive attention mask, (B, 1, S) for a clean (1, 1, S) block
    add_mask = ((1.0 - attention_mask.astype(jnp.float32)) * -10000.0
                ).reshape(B, 1, S)

    # --- transformer encoder layers -----------------------------------------
    for lp in params["layers"]:
        # fused QKV projection, bf16 output feeds the attention MXU directly
        qkv = dense(x, lp["wqkv"], lp["bqkv"], out_dtype=jnp.bfloat16)   # (B*S, 3H)
        # head-major layout so each (b, h) grid step gets a lane-dense tile
        qkv5 = qkv.reshape(B, S, 3, nh, dh).transpose(2, 0, 3, 1, 4)     # (3,B,nh,S,dh)
        ctx = attention(qkv5, add_mask, out_dtype=jnp.bfloat16)          # (B,nh,S,dh)
        ctx = ctx.transpose(0, 2, 1, 3).reshape(B * S, H)                # (B*S, H)

        # out-projection: f32 output -> direct-accumulate dense variant
        attn_out = dense(ctx, lp["wo"], lp["bo"], out_dtype=jnp.float32)
        x = layernorm(attn_out, lp["ln1_g"], lp["ln1_b"], residual=x,
                      out_dtype=jnp.bfloat16)                            # fused add+LN

        ffn = dense(x, lp["w1"], lp["b1"], activation="gelu",
                    out_dtype=jnp.bfloat16)
        ffn = dense(ffn, lp["w2"], lp["b2"], out_dtype=jnp.bfloat16)
        x = layernorm(ffn, lp["ln2_g"], lp["ln2_b"], residual=x,
                      out_dtype=jnp.bfloat16)                            # fused add+LN

    # --- pooler ([CLS]) + NSP head -------------------------------------------
    # Kept in plain XLA: (B, H) / (B, 2) outputs are lane-sparse and launch
    # overhead would dominate a Pallas call at this size.
    cls = x.reshape(B, S, H)[:, 0, :].astype(jnp.float32)                # (B, H)
    pooled = jnp.tanh(cls @ params["pooler_w"] + params["pooler_b"])
    logits = pooled @ params["nsp_w"] + params["nsp_b"]                  # (B, 2)

    if labels is not None:
        # CE loss is a scalar reduction -> plain JAX glue, not a hot path.
        logp = jax.nn.log_softmax(logits, axis=-1)
        loss = -jnp.mean(jnp.take_along_axis(logp, labels[:, None], axis=-1))
        return loss, logits
    return logits


# ---------------------------------------------------------------------------
# Main
# ---------------------------------------------------------------------------

if __name__ == "__main__":
    key = jax.random.PRNGKey(0)
    pkey, dkey = jax.random.split(key)

    params = init_params(pkey, CFG)

    B, S = 2, 8
    input_ids = jax.random.randint(dkey, (B, S), 0, CFG["vocab_size"], jnp.int32)
    token_type_ids = jnp.concatenate(
        [jnp.zeros((B, S // 2), jnp.int32), jnp.ones((B, S // 2), jnp.int32)], axis=1)
    attention_mask = jnp.ones((B, S), jnp.int32)
    labels = jnp.array([0, 1], jnp.int32)

    logits = cross_encoder_forward(params, input_ids, token_type_ids, attention_mask)
    loss, logits2 = cross_encoder_forward(params, input_ids, token_type_ids,
                                          attention_mask, labels=labels)

    jax.block_until_ready((logits, loss, logits2))
    assert logits.shape == (B, 2)
    assert jnp.isfinite(logits).all() and jnp.isfinite(loss)
    print("KERNEL_OK")
</pallas_src>

<mosaic_0001>
module attributes {stable_mosaic.version = 11 : i64} {
  func.func @_ln_kernel(%arg0: i32, %arg1: memref<16x32xf32, #tpu.memory_space<vmem>>, %arg2: memref<1x32xf32, #tpu.memory_space<vmem>>, %arg3: memref<1x32xf32, #tpu.memory_space<vmem>>, %arg4: memref<16x32xbf16, #tpu.memory_space<vmem>>) attributes {dimension_semantics = [#tpu.dimension_semantics<parallel>], iteration_bounds = array<i64: 1>, scalar_prefetch = 0 : i64, scratch_operands = 0 : i64, tpu.core_type = #tpu.core_type<tc>, window_params = [{transform_indices = @transform_0, window_bounds = array<i64: 16, 32>}, {pipeline_mode = #tpu.pipeline_mode<synchronous>, transform_indices = @transform_1, window_bounds = array<i64: 1, 32>}, {pipeline_mode = #tpu.pipeline_mode<synchronous>, transform_indices = @transform_2, window_bounds = array<i64: 1, 32>}, {transform_indices = @transform_3, window_bounds = array<i64: 16, 32>}]} {
    %c0 = arith.constant 0 : index
    %c0_0 = arith.constant 0 : index
    %0 = vector.load %arg1[%c0, %c0_0] : memref<16x32xf32, #tpu.memory_space<vmem>>, vector<16x32xf32>
    %cst = arith.constant dense<0.000000e+00> : vector<16xf32>
    %1 = vector.multi_reduction <add>, %0, %cst [1] : vector<16x32xf32> to vector<16xf32>
    %2 = vector.shape_cast %1 : vector<16xf32> to vector<16x1xf32>
    %cst_1 = arith.constant 3.200000e+01 : f32
    %3 = vector.broadcast %cst_1 : f32 to vector<16x1xf32>
    %4 = arith.divf %2, %3 : vector<16x1xf32>
    %5 = vector.broadcast %4 : vector<16x1xf32> to vector<16x32xf32>
    %6 = arith.subf %0, %5 : vector<16x32xf32>
    %7 = arith.mulf %6, %6 : vector<16x32xf32>
    %cst_2 = arith.constant dense<0.000000e+00> : vector<16xf32>
    %8 = vector.multi_reduction <add>, %7, %cst_2 [1] : vector<16x32xf32> to vector<16xf32>
    %9 = vector.shape_cast %8 : vector<16xf32> to vector<16x1xf32>
    %cst_3 = arith.constant 3.200000e+01 : f32
    %10 = vector.broadcast %cst_3 : f32 to vector<16x1xf32>
    %11 = arith.divf %9, %10 : vector<16x1xf32>
    %12 = vector.broadcast %4 : vector<16x1xf32> to vector<16x32xf32>
    %13 = arith.subf %0, %12 : vector<16x32xf32>
    %cst_4 = arith.constant 9.99999996E-13 : f32
    %14 = vector.broadcast %cst_4 : f32 to vector<16x1xf32>
    %15 = arith.addf %11, %14 : vector<16x1xf32>
    %16 = math.rsqrt %15 : vector<16x1xf32>
    %17 = vector.broadcast %16 : vector<16x1xf32> to vector<16x32xf32>
    %18 = arith.mulf %13, %17 : vector<16x32xf32>
    %c0_5 = arith.constant 0 : index
    %c0_6 = arith.constant 0 : index
    %19 = vector.load %arg2[%c0_5, %c0_6] : memref<1x32xf32, #tpu.memory_space<vmem>>, vector<1x32xf32>
    %20 = vector.broadcast %19 : vector<1x32xf32> to vector<16x32xf32>
    %21 = arith.mulf %18, %20 : vector<16x32xf32>
    %c0_7 = arith.constant 0 : index
    %c0_8 = arith.constant 0 : index
    %22 = vector.load %arg3[%c0_7, %c0_8] : memref<1x32xf32, #tpu.memory_space<vmem>>, vector<1x32xf32>
    %23 = vector.broadcast %22 : vector<1x32xf32> to vector<16x32xf32>
    %24 = arith.addf %21, %23 : vector<16x32xf32>
    %25 = arith.truncf %24 : vector<16x32xf32> to vector<16x32xbf16>
    %c0_9 = arith.constant 0 : index
    %c0_10 = arith.constant 0 : index
    %26 = vector.load %arg4[%c0_9, %c0_10] : memref<16x32xbf16, #tpu.memory_space<vmem>>, vector<16x32xbf16>
    tpu.vector_store %arg4[%c0_9, %c0_10], %25 {strides = array<i32>} : memref<16x32xbf16, #tpu.memory_space<vmem>>, vector<16x32xbf16>,
    return
  }
  func.func @transform_0(%arg0: i32) -> (i32, i32) {
    %c0_i32 = arith.constant 0 : i32
    %c0_i32_0 = arith.constant 0 : i32
    return %arg0, %c0_i32 : i32, i32
  }
  func.func @transform_1(%arg0: i32) -> (i32, i32) {
    %c0_i32 = arith.constant 0 : i32
    %c0_i32_0 = arith.constant 0 : i32
    %c0_i32_1 = arith.constant 0 : i32
    return %c0_i32, %c0_i32_0 : i32, i32
  }
  func.func @transform_2(%arg0: i32) -> (i32, i32) {
    %c0_i32 = arith.constant 0 : i32
    %c0_i32_0 = arith.constant 0 : i32
    %c0_i32_1 = arith.constant 0 : i32
    return %c0_i32, %c0_i32_0 : i32, i32
  }
  func.func @transform_3(%arg0: i32) -> (i32, i32) {
    %c0_i32 = arith.constant 0 : i32
    %c0_i32_0 = arith.constant 0 : i32
    return %arg0, %c0_i32 : i32, i32
  }
}

</mosaic_0001>

<bundles_post_ra>
// kernel: tpu_custom_call.1
= control target key start
LH: loop header
LB: loop body
LE: loop exit
PB: predicated region body
PF: predicated region fallthrough
CT: control target
= control target key end

     0   :  { %8 = vsyncpa [#allocation3], 0  ;;  %s229_s0 = inlined_call_operand.hbm [shape: f32[16,32], index: 0, kind: input, shape index: {}]   ;;  %s230_s1 = inlined_call_operand.vmem [shape: f32[1,32], index: 1, kind: input, shape index: {}]   ;;  %s231_s2 = inlined_call_operand.vmem [shape: f32[1,32], index: 2, kind: input, shape index: {}]   ;;  %s232_s3 = inlined_call_operand.hbm [shape: bf16[16,32], index: 3, kind: output, shape index: {}]  }
   0x1   :  { %9 = vsyncpa [#allocation4], 0  ;;  %s169_s12 = smov [#allocation2]   ;;  %s121_s16 = scalar_lea.hbm %s229_s0, 256 }
   0x2   :  { %s15_s13 = sshll.u32 %s169_s12, 4  ;;  %p122_p0 = scmp.ne.s32.totalorder %s229_s0, %s121_s16  ;;  %s16_s13 = int_to_ptr.vmem [resolvable:$true] %s15_s13 }
   0x3   :  { %p125_p1 = scmp.lt.u32.totalorder %s121_s16, %s229_s0 }
   0x5   :  { %p127_p2 = pnand %p125_p1, %p122_p0 }
   0x7   :  { %130 = shalt.err (!%p127_p2)
}
   0x8   :  { %s131_s21 = scalar_lea.vmem %s16_s13, 256  ;;  %p136_p4 = scmp.lt.s32.totalorder %s16_s13, %s16_s13 }
   0x9   :  { %p132_p3 = scmp.ne.s32.totalorder %s16_s13, %s131_s21  ;;  %p137_p5 = scmp.lt.s32.totalorder %s131_s21, %s131_s21 }
   0xb   :  { %p138_p6 = por %p137_p5, %p136_p4 }
   0xd   :  { %p139_p7 = pnand %p138_p6, %p132_p3 }
   0xf   :  { %142 = shalt.err (!%p139_p7)
}
  0x10   :  { %s170_s22 = smov 128   ;;  %s171_s23 = smov 8  }
  0x11   :  { %21 = dma.hbm_to_vmem [thread:$0]  %s229_s0, 256, %s16_s13, [#allocation3], %s170_s22, %s170_s22, %s171_s23  }
  0x12   :  { %165 = dma.done.wait [#allocation3], 256  }
  0x13   :  { %166 = vsyncadd [#allocation3], 4294967040  ;;  %vm31_vm0 = vcmask 261120   ;;  %v29_v0 = vld [vmem:[#allocation2] sm:$0xff]  ;;  %v30_v1 = vld [vmem:[#allocation2 + $0x8] sm:$0xff]  ;;  %vm85_vm1 = vcmask 257024  }
  0x14   :  { %v32_v2 = vsel %vm31_vm0, %v29_v0, 0.0  ;;  %v35_v3 = vsel %vm31_vm0, %v30_v1, 0.0  ;;  %v105_v21 = vld [vmem:[%s230_s1] ss:$0 sm:$0xff]  ;;  %s172_s29 = smov [#allocation5]  }
  0x15   :  { %33 = vadd.xlane.f32.xlu0 %v32_v2  ;;  %v106_v23 = vld [vmem:[%s231_s2] ss:$0 sm:$0xff]  ;;  %s93_s30 = sshll.u32 %s172_s29, 4  ;;  %s94_s30 = int_to_ptr.vmem [resolvable:$true] %s93_s30 }
  0x16   :  { %s143_s1 = scalar_lea.vmem %s94_s30, 128  ;;  %p148_p9 = scmp.lt.s32.totalorder %s94_s30, %s94_s30 }
  0x17   :  { %p144_p8 = scmp.ne.s32.totalorder %s94_s30, %s143_s1  ;;  %p149_p10 = scmp.lt.s32.totalorder %s143_s1, %s143_s1 }
  0x19   :  { %36 = vadd.xlane.f32.xlu0 %v35_v3  ;;  %p150_p11 = por %p149_p10, %p148_p9 }
  0x1b   :  { %p151_p12 = pnand %p150_p11, %p144_p8 }
  0xa2   :  { %v34_v4 = vpop.xlane.xlu0 %33 }
  0xa3   :  { %v39_v5 = vmul.f32 0.03125, %v34_v4 }
  0xa5   :  { %v41_v6 = vsub.f32 %v29_v0, %v39_v5 }
  0xa6   :  { %v37_v7 = vpop.xlane.xlu0 %36 }
  0xa7   :  { %v40_v8 = vmul.f32 0.03125, %v37_v7  ;;  %v43_v9 = vmul.f32 %v41_v6, %v41_v6 }
  0xa9   :  { %v42_v10 = vsub.f32 %v30_v1, %v40_v8  ;;  %v45_v11 = vsel %vm31_vm0, %v43_v9, 0.0 }
  0xaa   :  { %46 = vadd.xlane.f32.xlu1 %v45_v11 }
  0xab   :  { %v44_v12 = vmul.f32 %v42_v10, %v42_v10 }
  0xad   :  { %v48_v13 = vsel %vm31_vm0, %v44_v12, 0.0 }
  0xae   :  { %49 = vadd.xlane.f32.xlu1 %v48_v13 }
 0x137   :  { %v47_v14 = vpop.xlane.xlu1 %46 }
 0x138   :  { %v51_v15 = vmul.f32 0.03125, %v47_v14 }
 0x13a   :  { %v53_v16 = vadd.f32 1e-12, %v51_v15 }
 0x13b   :  { %v50_v17 = vpop.xlane.xlu1 %49 }
 0x13c   :  { %117 = vrsqrt.f32 %v53_v16  ;;  %v52_v18 = vmul.f32 0.03125, %v50_v17 }
 0x13e   :  { %v54_v19 = vadd.f32 1e-12, %v52_v18 }
 0x140   :  { %119 = vrsqrt.f32 %v54_v19 }
 0x146   :  { %v118_v20 = vpop.eup %117 }
 0x147   :  { %v57_v22 = vmul.f32 %v118_v20, %v41_v6 }
 0x149   :  { %v66_v24 = vmul.f32 %v105_v21, %v57_v22 }
 0x14a   :  { %v120_v25 = vpop.eup %119 }
 0x14b   :  { %v58_v26 = vmul.f32 %v120_v25, %v42_v10  ;;  %v75_v27 = vadd.f32 %v106_v23, %v66_v24 }
 0x14d   :  { %v67_v28 = vmul.f32 %v105_v21, %v58_v26  ;;  %v109_v29 = vpack.c.bf16 %v75_v27, %v75_v27 }
 0x14f   :  { %v76_v30 = vadd.f32 %v106_v23, %v67_v28  ;;  %86 = vst.msk [vmem:[#allocation5] sm:$0xf] %vm85_vm1, %v109_v29 }
 0x151   :  { %v110_v31 = vpack.c.bf16 %v76_v30, %v76_v30 }
 0x153   :  { %87 = vst.msk [vmem:[#allocation5 + $0x4] sm:$0xf] %vm85_vm1, %v110_v31 }
 0x154   :  { %154 = shalt.err (!%p151_p12)
}
 0x155   :  { %s155_s5 = scalar_lea.hbm %s232_s3, 128 }
 0x156   :  { %p156_p13 = scmp.ne.s32.totalorder %s232_s3, %s155_s5  ;;  %p159_p0 = scmp.lt.u32.totalorder %s155_s5, %s232_s3 }
 0x158   :  { %p161_p1 = pnand %p159_p0, %p156_p13 }
 0x15a   :  { %164 = shalt.err (!%p161_p1)
}
 0x15b   :  { %s173_s10 = smov 64   ;;  %s174_s11 = smov 4  }
 0x15c   :  { %99 = dma.vmem_to_hbm [thread:$0]  %s94_s30, 128, %s232_s3, [#allocation4], %s173_s10, %s173_s10, %s174_s11  }
 0x15d   :  { %167 = dma.done.wait [#allocation4], 128  }
 0x15e   :  { %168 = vsyncadd [#allocation4], 4294967168 }
 0x15f   :  { %103 = vsyncpa [#allocation3], 1 }
 0x160   :  { %104 = vsyncpa [#allocation4], 1 }

</bundles_post_ra>
